<compile_context>
chip_gen: v7x
topology: tpu7x:2x2x1
jax: 0.10.0
libtpu: 0.0.40
codegen_flags: <defaults>
</compile_context>

<pallas_src>
import functools

import jax
import jax.numpy as jnp
from jax import lax
from jax.experimental import pallas as pl
from jax.experimental.pallas import tpu as pltpu

NUM_GROUPS = 4
EPS = 1e-5


def _round_up(x, m):
    return ((x + m - 1) // m) * m


def _conv_gn_relu_kernel(patches_ref, w_ref, b_ref, gamma_ref, beta_ref, out_ref,
                         s_ref, ss_ref, *, cout, num_groups, hw_total, thw, n_hw):
    # patches_ref: (1, thw, K)  bf16, K = 9*Cin (unpadded)
    # w_ref:       (K, Cp)      bf16, Cp = round_up(Cout, 128), zero padded channels
    # b_ref/gamma_ref/beta_ref: (1, Cp) f32, zero padded beyond Cout
    # out_ref:     (1, HW, Cp)  f32, resident across the HW grid axis (index_map const)
    # s_ref/ss_ref: (1, Cp) f32 scratch accumulators (per-channel sum / sum-of-squares)
    hw_i = pl.program_id(1)

    @pl.when(hw_i == 0)
    def _():
        s_ref[...] = jnp.zeros_like(s_ref)
        ss_ref[...] = jnp.zeros_like(ss_ref)

    # --- conv tile: bf16 MXU matmul, f32 accumulation (no bias here) -----------
    x = patches_ref[0]                                                # (thw, K) bf16
    y = jnp.dot(x, w_ref[...], preferred_element_type=jnp.float32)    # (thw, Cp) f32

    # --- accumulate per-channel moments of the raw conv output -----------------
    s_ref[...] += jnp.sum(y, axis=0, keepdims=True)                   # (1, Cp)
    ss_ref[...] += jnp.sum(y * y, axis=0, keepdims=True)              # (1, Cp)

    # stash raw conv tile in the resident output block
    off = pl.multiple_of(hw_i * thw, thw)
    out_ref[0, pl.ds(off, thw), :] = y.astype(out_ref.dtype)

    # --- finalize: GroupNorm stats + fused normalize/affine/ReLU ---------------
    @pl.when(hw_i == n_hw - 1)
    def _():
        Cp = s_ref.shape[-1]
        cg = cout // num_groups
        inv_cnt = 1.0 / float(hw_total * cg)                          # precomputed recip

        b = b_ref[...]                                                # (1, Cp) f32
        # fold conv bias into the moments:  y_full = y_raw + b
        s = s_ref[...] + float(hw_total) * b
        ss = ss_ref[...] + 2.0 * b * s_ref[...] + float(hw_total) * b * b

        ch = lax.broadcasted_iota(jnp.int32, (1, Cp), 1)
        mean_c = jnp.zeros((1, Cp), jnp.float32)
        inv_c = jnp.zeros((1, Cp), jnp.float32)
        for g in range(num_groups):                                   # static, tiny (1,Cp) ops
            lo, hi = g * cg, (g + 1) * cg                             # real channels only
            mu = jnp.sum(s[:, lo:hi], axis=1, keepdims=True) * inv_cnt       # (1,1)
            ex2 = jnp.sum(ss[:, lo:hi], axis=1, keepdims=True) * inv_cnt     # (1,1)
            var = jnp.maximum(ex2 - mu * mu, 0.0)                     # biased var (PyTorch GN)
            rstd = lax.rsqrt(var + EPS)
            in_g = jnp.logical_and(ch >= lo, ch < hi)
            mean_c = jnp.where(in_g, mu, mean_c)
            inv_c = jnp.where(in_g, rstd, inv_c)

        # Fused normalize + affine + ReLU:  out = relu(y_raw * scale + shift)
        # Padded channels: gamma = 0 -> scale = 0; beta = 0, b = 0 -> shift = 0 -> out 0.
        scale = inv_c * gamma_ref[...]                                # (1, Cp)
        shift = beta_ref[...] + (b - mean_c) * scale                  # (1, Cp)
        for t in range(n_hw):                                         # tile-by-tile epilogue
            o = t * thw
            yt = out_ref[0, pl.ds(o, thw), :]
            out_ref[0, pl.ds(o, thw), :] = jnp.maximum(
                yt * scale + shift, 0.0).astype(out_ref.dtype)


def conv_gn_relu(x_nchw, w_oihw, bias, gamma, beta, *, thw=128):
    """x_nchw: (N, Cin, H, W) float32. Returns (N, Cout, H, W) float32."""
    N, Cin, H, W = x_nchw.shape
    Cout = w_oihw.shape[0]
    assert Cout % NUM_GROUPS == 0, "GroupNorm requires Cout % 4 == 0"
    HW = H * W
    K = 9 * Cin
    Cp = _round_up(Cout, 128)     # lane-dense channel dim

    # HW tile: divisor of HW, multiple of 8 (sublane); fall back to one tile per sample.
    if HW % thw != 0 or thw % 8 != 0:
        thw = HW
    n_hw = HW // thw

    # --- glue: im2col in NHWC, bf16 operands, no K padding ---------------------
    x_nhwc = jnp.transpose(x_nchw, (0, 2, 3, 1))                      # (N, H, W, Cin)
    xp = jnp.pad(x_nhwc, ((0, 0), (1, 1), (1, 1), (0, 0)))
    # patch feature order: (ky, kx, ci), matching the weight transpose below.
    patches = jnp.concatenate(
        [xp[:, dy:dy + H, dx:dx + W, :] for dy in range(3) for dx in range(3)],
        axis=-1,
    ).reshape(N, HW, K).astype(jnp.bfloat16)                          # (N, HW, K) bf16

    # weight (Cout, Cin, 3, 3) -> (ky, kx, ci, co) -> (K, Cout) -> channel-padded (K, Cp)
    w_mat = jnp.transpose(w_oihw, (2, 3, 1, 0)).reshape(K, Cout)
    w_mat = jnp.pad(w_mat, ((0, 0), (0, Cp - Cout))).astype(jnp.bfloat16)
    b2 = jnp.pad(bias, (0, Cp - Cout)).reshape(1, Cp).astype(jnp.float32)
    g2 = jnp.pad(gamma, (0, Cp - Cout)).reshape(1, Cp).astype(jnp.float32)
    be2 = jnp.pad(beta, (0, Cp - Cout)).reshape(1, Cp).astype(jnp.float32)

    kernel = functools.partial(
        _conv_gn_relu_kernel, cout=Cout, num_groups=NUM_GROUPS,
        hw_total=HW, thw=thw, n_hw=n_hw)

    cost = pl.CostEstimate(
        flops=2 * N * HW * K * Cp + 8 * N * HW * Cp,
        transcendentals=N * NUM_GROUPS,
        bytes_accessed=2 * (N * HW * K + K * Cp) + 4 * (3 * Cp + N * HW * Cp),
    )

    out = pl.pallas_call(
        kernel,
        out_shape=jax.ShapeDtypeStruct((N, HW, Cp), jnp.float32),
        grid=(N, n_hw),
        in_specs=[
            pl.BlockSpec((1, thw, K), lambda n, h: (n, h, 0)),   # patches: tiled over HW
            pl.BlockSpec((K, Cp), lambda n, h: (0, 0)),          # weights: const in inner axis
            pl.BlockSpec((1, Cp), lambda n, h: (0, 0)),
            pl.BlockSpec((1, Cp), lambda n, h: (0, 0)),
            pl.BlockSpec((1, Cp), lambda n, h: (0, 0)),
        ],
        # output block resident across the HW axis (accumulator pattern)
        out_specs=pl.BlockSpec((1, HW, Cp), lambda n, h: (n, 0, 0)),
        scratch_shapes=[pltpu.VMEM((1, Cp), jnp.float32),
                        pltpu.VMEM((1, Cp), jnp.float32)],
        compiler_params=pltpu.CompilerParams(
            dimension_semantics=("parallel", "arbitrary")),
        cost_estimate=cost,
    )(patches, w_mat, b2, g2, be2)

    # drop padded channels, (N, HW, Cout) -> (N, Cout, H, W)
    out = out[:, :, :Cout]
    return jnp.transpose(out.reshape(N, H, W, Cout), (0, 3, 1, 2))


def _reference(x_nchw, w_oihw, bias, gamma, beta):
    y = lax.conv_general_dilated(
        x_nchw, w_oihw, window_strides=(1, 1), padding=((1, 1), (1, 1)),
        dimension_numbers=("NCHW", "OIHW", "NCHW"))
    y = y + bias[None, :, None, None]
    N, C, H, W = y.shape
    yg = y.reshape(N, NUM_GROUPS, C // NUM_GROUPS, H, W)
    mu = yg.mean(axis=(2, 3, 4), keepdims=True)
    var = ((yg - mu) ** 2).mean(axis=(2, 3, 4), keepdims=True)
    yn = ((yg - mu) / jnp.sqrt(var + EPS)).reshape(N, C, H, W)
    return jnp.maximum(yn * gamma[None, :, None, None] + beta[None, :, None, None], 0.0)


if __name__ == "__main__":
    key = jax.random.PRNGKey(0)
    k_x, k_w, k_b, k_g, k_be = jax.random.split(key, 5)

    N, Cin, H, W = 2, 4, 16, 16
    Cout = 16

    x = jax.random.normal(k_x, (N, Cin, H, W), dtype=jnp.float32)
    # deterministic synthetic parameters (PyTorch layout: (Cout, Cin, 3, 3))
    w = jax.random.normal(k_w, (Cout, Cin, 3, 3), dtype=jnp.float32) * 0.1
    b = jax.random.normal(k_b, (Cout,), dtype=jnp.float32) * 0.1
    gamma = 1.0 + 0.1 * jax.random.normal(k_g, (Cout,), dtype=jnp.float32)
    beta = 0.1 * jax.random.normal(k_be, (Cout,), dtype=jnp.float32)

    out = jax.block_until_ready(conv_gn_relu(x, w, b, gamma, beta))

    ref = _reference(x, w, b, gamma, beta)
    assert out.shape == ref.shape == (N, Cout, H, W)
    # bf16 MXU operands -> tolerance loosened vs the f32 reference (GN stays f32).
    assert jnp.allclose(out, ref, atol=5e-2, rtol=5e-2), "mismatch vs reference"

    print("KERNEL_OK")
</pallas_src>

<mosaic_0001>
module attributes {stable_mosaic.version = 11 : i64} {
  func.func @_conv_gn_relu_kernel(%arg0: i32, %arg1: i32, %arg2: memref<1x128x36xbf16, #tpu.memory_space<vmem>>, %arg3: memref<36x128xbf16, #tpu.memory_space<vmem>>, %arg4: memref<1x128xf32, #tpu.memory_space<vmem>>, %arg5: memref<1x128xf32, #tpu.memory_space<vmem>>, %arg6: memref<1x128xf32, #tpu.memory_space<vmem>>, %arg7: memref<1x256x128xf32, #tpu.memory_space<vmem>>, %arg8: memref<1x128xf32, #tpu.memory_space<vmem>>, %arg9: memref<1x128xf32, #tpu.memory_space<vmem>>) attributes {dimension_semantics = [#tpu.dimension_semantics<parallel>, #tpu.dimension_semantics<arbitrary>], iteration_bounds = array<i64: 2, 2>, scalar_prefetch = 0 : i64, scratch_operands = 2 : i64, tpu.core_type = #tpu.core_type<tc>, window_params = [{transform_indices = @transform_0, window_bounds = array<i64: 1, 128, 36>}, {pipeline_mode = #tpu.pipeline_mode<synchronous>, transform_indices = @transform_1, window_bounds = array<i64: 36, 128>}, {pipeline_mode = #tpu.pipeline_mode<synchronous>, transform_indices = @transform_2, window_bounds = array<i64: 1, 128>}, {pipeline_mode = #tpu.pipeline_mode<synchronous>, transform_indices = @transform_3, window_bounds = array<i64: 1, 128>}, {pipeline_mode = #tpu.pipeline_mode<synchronous>, transform_indices = @transform_4, window_bounds = array<i64: 1, 128>}, {transform_indices = @transform_5, window_bounds = array<i64: 1, 256, 128>}]} {
    %c0_i32 = arith.constant 0 : i32
    %0 = arith.cmpi eq, %arg1, %c0_i32 : i32
    %1 = arith.extui %0 : i1 to i32
    %c0_i32_0 = arith.constant 0 : i32
    %2 = arith.cmpi ne, %1, %c0_i32_0 : i32
    scf.if %2 {
      %cst_18 = arith.constant 0.000000e+00 : f32
      %27 = vector.broadcast %cst_18 : f32 to vector<1x128xf32>
      %c0_19 = arith.constant 0 : index
      %c0_20 = arith.constant 0 : index
      %28 = vector.load %arg8[%c0_19, %c0_20] : memref<1x128xf32, #tpu.memory_space<vmem>>, vector<1x128xf32>
      tpu.vector_store %arg8[%c0_19, %c0_20], %27 {strides = array<i32>} : memref<1x128xf32, #tpu.memory_space<vmem>>, vector<1x128xf32>,
      %cst_21 = arith.constant 0.000000e+00 : f32
      %29 = vector.broadcast %cst_21 : f32 to vector<1x128xf32>
      %c0_22 = arith.constant 0 : index
      %c0_23 = arith.constant 0 : index
      %30 = vector.load %arg9[%c0_22, %c0_23] : memref<1x128xf32, #tpu.memory_space<vmem>>, vector<1x128xf32>
      tpu.vector_store %arg9[%c0_22, %c0_23], %29 {strides = array<i32>} : memref<1x128xf32, #tpu.memory_space<vmem>>, vector<1x128xf32>,
    } else {
    }
    %c0 = arith.constant 0 : index
    %c0_1 = arith.constant 0 : index
    %c0_2 = arith.constant 0 : index
    %3 = vector.load %arg2[%c0, %c0_1, %c0_2] : memref<1x128x36xbf16, #tpu.memory_space<vmem>>, vector<1x128x36xbf16>
    %4 = vector.shape_cast %3 : vector<1x128x36xbf16> to vector<128x36xbf16>
    %c0_3 = arith.constant 0 : index
    %c0_4 = arith.constant 0 : index
    %5 = vector.load %arg3[%c0_3, %c0_4] : memref<36x128xbf16, #tpu.memory_space<vmem>>, vector<36x128xbf16>
    %cst = arith.constant dense<0.000000e+00> : vector<128x128xf32>
    %6 = tpu.matmul %4, %5, %cst {dimension_numbers = #tpu.dot_dimension_numbers<[1], [0], [0], [1], [0, 0, 1, 1], [], []>} : vector<128x36xbf16>, vector<36x128xbf16>, vector<128x128xf32> -> vector<128x128xf32>
    %c0_5 = arith.constant 0 : index
    %c0_6 = arith.constant 0 : index
    %7 = vector.load %arg8[%c0_5, %c0_6] : memref<1x128xf32, #tpu.memory_space<vmem>>, vector<1x128xf32>
    %cst_7 = arith.constant dense<0.000000e+00> : vector<128xf32>
    %8 = vector.multi_reduction <add>, %6, %cst_7 [0] : vector<128x128xf32> to vector<128xf32>
    %9 = vector.shape_cast %8 : vector<128xf32> to vector<1x128xf32>
    %10 = arith.addf %7, %9 : vector<1x128xf32>
    %c0_8 = arith.constant 0 : index
    %c0_9 = arith.constant 0 : index
    %11 = vector.load %arg8[%c0_8, %c0_9] : memref<1x128xf32, #tpu.memory_space<vmem>>, vector<1x128xf32>
    tpu.vector_store %arg8[%c0_8, %c0_9], %10 {strides = array<i32>} : memref<1x128xf32, #tpu.memory_space<vmem>>, vector<1x128xf32>,
    %c0_10 = arith.constant 0 : index
    %c0_11 = arith.constant 0 : index
    %12 = vector.load %arg9[%c0_10, %c0_11] : memref<1x128xf32, #tpu.memory_space<vmem>>, vector<1x128xf32>
    %13 = arith.mulf %6, %6 : vector<128x128xf32>
    %cst_12 = arith.constant dense<0.000000e+00> : vector<128xf32>
    %14 = vector.multi_reduction <add>, %13, %cst_12 [0] : vector<128x128xf32> to vector<128xf32>
    %15 = vector.shape_cast %14 : vector<128xf32> to vector<1x128xf32>
    %16 = arith.addf %12, %15 : vector<1x128xf32>
    %c0_13 = arith.constant 0 : index
    %c0_14 = arith.constant 0 : index
    %17 = vector.load %arg9[%c0_13, %c0_14] : memref<1x128xf32, #tpu.memory_space<vmem>>, vector<1x128xf32>
    tpu.vector_store %arg9[%c0_13, %c0_14], %16 {strides = array<i32>} : memref<1x128xf32, #tpu.memory_space<vmem>>, vector<1x128xf32>,
    %c128_i32 = arith.constant 128 : i32
    %18 = arith.muli %arg1, %c128_i32 : i32
    %19 = tpu.assume_multiple %18, 128 : i32
    %c0_15 = arith.constant 0 : index
    %20 = arith.index_cast %19 : i32 to index
    %c0_16 = arith.constant 0 : index
    %21 = vector.load %arg7[%c0_15, %20, %c0_16] : memref<1x256x128xf32, #tpu.memory_space<vmem>>, vector<1x128x128xf32>
    %22 = vector.shape_cast %21 : vector<1x128x128xf32> to vector<128x128xf32>
    %23 = vector.shape_cast %6 : vector<128x128xf32> to vector<1x128x128xf32>
    tpu.vector_store %arg7[%c0_15, %20, %c0_16], %23 {strides = array<i32>} : memref<1x256x128xf32, #tpu.memory_space<vmem>>, vector<1x128x128xf32>,
    %c1_i32 = arith.constant 1 : i32
    %24 = arith.cmpi eq, %arg1, %c1_i32 : i32
    %25 = arith.extui %24 : i1 to i32
    %c0_i32_17 = arith.constant 0 : i32
    %26 = arith.cmpi ne, %25, %c0_i32_17 : i32
    scf.if %26 {
      %c0_18 = arith.constant 0 : index
      %c0_19 = arith.constant 0 : index
      %27 = vector.load %arg4[%c0_18, %c0_19] : memref<1x128xf32, #tpu.memory_space<vmem>>, vector<1x128xf32>
      %c0_20 = arith.constant 0 : index
      %c0_21 = arith.constant 0 : index
      %28 = vector.load %arg8[%c0_20, %c0_21] : memref<1x128xf32, #tpu.memory_space<vmem>>, vector<1x128xf32>
      %cst_22 = arith.constant 2.560000e+02 : f32
      %29 = vector.broadcast %cst_22 : f32 to vector<1x128xf32>
      %30 = arith.mulf %29, %27 : vector<1x128xf32>
      %31 = arith.addf %28, %30 : vector<1x128xf32>
      %c0_23 = arith.constant 0 : index
      %c0_24 = arith.constant 0 : index
      %32 = vector.load %arg9[%c0_23, %c0_24] : memref<1x128xf32, #tpu.memory_space<vmem>>, vector<1x128xf32>
      %cst_25 = arith.constant 2.000000e+00 : f32
      %33 = vector.broadcast %cst_25 : f32 to vector<1x128xf32>
      %34 = arith.mulf %33, %27 : vector<1x128xf32>
      %c0_26 = arith.constant 0 : index
      %c0_27 = arith.constant 0 : index
      %35 = vector.load %arg8[%c0_26, %c0_27] : memref<1x128xf32, #tpu.memory_space<vmem>>, vector<1x128xf32>
      %36 = arith.mulf %34, %35 : vector<1x128xf32>
      %37 = arith.addf %32, %36 : vector<1x128xf32>
      %cst_28 = arith.constant 2.560000e+02 : f32
      %38 = vector.broadcast %cst_28 : f32 to vector<1x128xf32>
      %39 = arith.mulf %38, %27 : vector<1x128xf32>
      %40 = arith.mulf %39, %27 : vector<1x128xf32>
      %41 = arith.addf %37, %40 : vector<1x128xf32>
      %42 = tpu.iota {dimensions = array<i32: 1>} : vector<1x128xi32>
      %cst_29 = arith.constant 0.000000e+00 : f32
      %43 = vector.broadcast %cst_29 : f32 to vector<1x128xf32>
      %cst_30 = arith.constant 0.000000e+00 : f32
      %44 = vector.broadcast %cst_30 : f32 to vector<1x128xf32>
      %45 = vector.extract_strided_slice %31 {offsets = [0, 0], sizes = [1, 4], strides = [1, 1]} : vector<1x128xf32> to vector<1x4xf32>
      %cst_31 = arith.constant dense<0.000000e+00> : vector<1xf32>
      %46 = vector.multi_reduction <add>, %45, %cst_31 [1] : vector<1x4xf32> to vector<1xf32>
      %47 = vector.shape_cast %46 : vector<1xf32> to vector<1x1xf32>
      %cst_32 = arith.constant 9.765625E-4 : f32
      %48 = vector.broadcast %cst_32 : f32 to vector<1x1xf32>
      %49 = arith.mulf %47, %48 : vector<1x1xf32>
      %50 = vector.extract_strided_slice %41 {offsets = [0, 0], sizes = [1, 4], strides = [1, 1]} : vector<1x128xf32> to vector<1x4xf32>
      %cst_33 = arith.constant dense<0.000000e+00> : vector<1xf32>
      %51 = vector.multi_reduction <add>, %50, %cst_33 [1] : vector<1x4xf32> to vector<1xf32>
      %52 = vector.shape_cast %51 : vector<1xf32> to vector<1x1xf32>
      %cst_34 = arith.constant 9.765625E-4 : f32
      %53 = vector.broadcast %cst_34 : f32 to vector<1x1xf32>
      %54 = arith.mulf %52, %53 : vector<1x1xf32>
      %55 = arith.mulf %49, %49 : vector<1x1xf32>
      %56 = arith.subf %54, %55 : vector<1x1xf32>
      %cst_35 = arith.constant 0.000000e+00 : f32
      %57 = vector.broadcast %cst_35 : f32 to vector<1x1xf32>
      %58 = arith.maximumf %56, %57 : vector<1x1xf32>
      %cst_36 = arith.constant 9.99999974E-6 : f32
      %59 = vector.broadcast %cst_36 : f32 to vector<1x1xf32>
      %60 = arith.addf %58, %59 : vector<1x1xf32>
      %61 = math.rsqrt %60 : vector<1x1xf32>
      %c0_i32_37 = arith.constant 0 : i32
      %62 = vector.broadcast %c0_i32_37 : i32 to vector<1x128xi32>
      %63 = arith.cmpi sge, %42, %62 : vector<1x128xi32>
      %c4_i32 = arith.constant 4 : i32
      %64 = vector.broadcast %c4_i32 : i32 to vector<1x128xi32>
      %65 = arith.cmpi slt, %42, %64 : vector<1x128xi32>
      %66 = arith.andi %63, %65 : vector<1x128xi1>
      %67 = vector.shape_cast %49 : vector<1x1xf32> to vector<1x1xf32>
      %68 = vector.broadcast %67 : vector<1x1xf32> to vector<1x128xf32>
      %69 = arith.select %66, %68, %43 : vector<1x128xi1>, vector<1x128xf32>
      %70 = vector.shape_cast %61 : vector<1x1xf32> to vector<1x1xf32>
      %71 = vector.broadcast %70 : vector<1x1xf32> to vector<1x128xf32>
      %72 = arith.select %66, %71, %44 : vector<1x128xi1>, vector<1x128xf32>
      %73 = vector.extract_strided_slice %31 {offsets = [0, 4], sizes = [1, 4], strides = [1, 1]} : vector<1x128xf32> to vector<1x4xf32>
      %cst_38 = arith.constant dense<0.000000e+00> : vector<1xf32>
      %74 = vector.multi_reduction <add>, %73, %cst_38 [1] : vector<1x4xf32> to vector<1xf32>
      %75 = vector.shape_cast %74 : vector<1xf32> to vector<1x1xf32>
      %cst_39 = arith.constant 9.765625E-4 : f32
      %76 = vector.broadcast %cst_39 : f32 to vector<1x1xf32>
      %77 = arith.mulf %75, %76 : vector<1x1xf32>
      %78 = vector.extract_strided_slice %41 {offsets = [0, 4], sizes = [1, 4], strides = [1, 1]} : vector<1x128xf32> to vector<1x4xf32>
      %cst_40 = arith.constant dense<0.000000e+00> : vector<1xf32>
      %79 = vector.multi_reduction <add>, %78, %cst_40 [1] : vector<1x4xf32> to vector<1xf32>
      %80 = vector.shape_cast %79 : vector<1xf32> to vector<1x1xf32>
      %cst_41 = arith.constant 9.765625E-4 : f32
      %81 = vector.broadcast %cst_41 : f32 to vector<1x1xf32>
      %82 = arith.mulf %80, %81 : vector<1x1xf32>
      %83 = arith.mulf %77, %77 : vector<1x1xf32>
      %84 = arith.subf %82, %83 : vector<1x1xf32>
      %cst_42 = arith.constant 0.000000e+00 : f32
      %85 = vector.broadcast %cst_42 : f32 to vector<1x1xf32>
      %86 = arith.maximumf %84, %85 : vector<1x1xf32>
      %cst_43 = arith.constant 9.99999974E-6 : f32
      %87 = vector.broadcast %cst_43 : f32 to vector<1x1xf32>
      %88 = arith.addf %86, %87 : vector<1x1xf32>
      %89 = math.rsqrt %88 : vector<1x1xf32>
      %c4_i32_44 = arith.constant 4 : i32
      %90 = vector.broadcast %c4_i32_44 : i32 to vector<1x128xi32>
      %91 = arith.cmpi sge, %42, %90 : vector<1x128xi32>
      %c8_i32 = arith.constant 8 : i32
      %92 = vector.broadcast %c8_i32 : i32 to vector<1x128xi32>
      %93 = arith.cmpi slt, %42, %92 : vector<1x128xi32>
      %94 = arith.andi %91, %93 : vector<1x128xi1>
      %95 = vector.shape_cast %77 : vector<1x1xf32> to vector<1x1xf32>
      %96 = vector.broadcast %95 : vector<1x1xf32> to vector<1x128xf32>
      %97 = arith.select %94, %96, %69 : vector<1x128xi1>, vector<1x128xf32>
      %98 = vector.shape_cast %89 : vector<1x1xf32> to vector<1x1xf32>
      %99 = vector.broadcast %98 : vector<1x1xf32> to vector<1x128xf32>
      %100 = arith.select %94, %99, %72 : vector<1x128xi1>, vector<1x128xf32>
      %101 = vector.extract_strided_slice %31 {offsets = [0, 8], sizes = [1, 4], strides = [1, 1]} : vector<1x128xf32> to vector<1x4xf32>
      %cst_45 = arith.constant dense<0.000000e+00> : vector<1xf32>
      %102 = vector.multi_reduction <add>, %101, %cst_45 [1] : vector<1x4xf32> to vector<1xf32>
      %103 = vector.shape_cast %102 : vector<1xf32> to vector<1x1xf32>
      %cst_46 = arith.constant 9.765625E-4 : f32
      %104 = vector.broadcast %cst_46 : f32 to vector<1x1xf32>
      %105 = arith.mulf %103, %104 : vector<1x1xf32>
      %106 = vector.extract_strided_slice %41 {offsets = [0, 8], sizes = [1, 4], strides = [1, 1]} : vector<1x128xf32> to vector<1x4xf32>
      %cst_47 = arith.constant dense<0.000000e+00> : vector<1xf32>
      %107 = vector.multi_reduction <add>, %106, %cst_47 [1] : vector<1x4xf32> to vector<1xf32>
      %108 = vector.shape_cast %107 : vector<1xf32> to vector<1x1xf32>
      %cst_48 = arith.constant 9.765625E-4 : f32
      %109 = vector.broadcast %cst_48 : f32 to vector<1x1xf32>
      %110 = arith.mulf %108, %109 : vector<1x1xf32>
      %111 = arith.mulf %105, %105 : vector<1x1xf32>
      %112 = arith.subf %110, %111 : vector<1x1xf32>
      %cst_49 = arith.constant 0.000000e+00 : f32
      %113 = vector.broadcast %cst_49 : f32 to vector<1x1xf32>
      %114 = arith.maximumf %112, %113 : vector<1x1xf32>
      %cst_50 = arith.constant 9.99999974E-6 : f32
      %115 = vector.broadcast %cst_50 : f32 to vector<1x1xf32>
      %116 = arith.addf %114, %115 : vector<1x1xf32>
      %117 = math.rsqrt %116 : vector<1x1xf32>
      %c8_i32_51 = arith.constant 8 : i32
      %118 = vector.broadcast %c8_i32_51 : i32 to vector<1x128xi32>
      %119 = arith.cmpi sge, %42, %118 : vector<1x128xi32>
      %c12_i32 = arith.constant 12 : i32
      %120 = vector.broadcast %c12_i32 : i32 to vector<1x128xi32>
      %121 = arith.cmpi slt, %42, %120 : vector<1x128xi32>
      %122 = arith.andi %119, %121 : vector<1x128xi1>
      %123 = vector.shape_cast %105 : vector<1x1xf32> to vector<1x1xf32>
      %124 = vector.broadcast %123 : vector<1x1xf32> to vector<1x128xf32>
      %125 = arith.select %122, %124, %97 : vector<1x128xi1>, vector<1x128xf32>
      %126 = vector.shape_cast %117 : vector<1x1xf32> to vector<1x1xf32>
      %127 = vector.broadcast %126 : vector<1x1xf32> to vector<1x128xf32>
      %128 = arith.select %122, %127, %100 : vector<1x128xi1>, vector<1x128xf32>
      %129 = vector.extract_strided_slice %31 {offsets = [0, 12], sizes = [1, 4], strides = [1, 1]} : vector<1x128xf32> to vector<1x4xf32>
      %cst_52 = arith.constant dense<0.000000e+00> : vector<1xf32>
      %130 = vector.multi_reduction <add>, %129, %cst_52 [1] : vector<1x4xf32> to vector<1xf32>
      %131 = vector.shape_cast %130 : vector<1xf32> to vector<1x1xf32>
      %cst_53 = arith.constant 9.765625E-4 : f32
      %132 = vector.broadcast %cst_53 : f32 to vector<1x1xf32>
      %133 = arith.mulf %131, %132 : vector<1x1xf32>
      %134 = vector.extract_strided_slice %41 {offsets = [0, 12], sizes = [1, 4], strides = [1, 1]} : vector<1x128xf32> to vector<1x4xf32>
      %cst_54 = arith.constant dense<0.000000e+00> : vector<1xf32>
      %135 = vector.multi_reduction <add>, %134, %cst_54 [1] : vector<1x4xf32> to vector<1xf32>
      %136 = vector.shape_cast %135 : vector<1xf32> to vector<1x1xf32>
      %cst_55 = arith.constant 9.765625E-4 : f32
      %137 = vector.broadcast %cst_55 : f32 to vector<1x1xf32>
      %138 = arith.mulf %136, %137 : vector<1x1xf32>
      %139 = arith.mulf %133, %133 : vector<1x1xf32>
      %140 = arith.subf %138, %139 : vector<1x1xf32>
      %cst_56 = arith.constant 0.000000e+00 : f32
      %141 = vector.broadcast %cst_56 : f32 to vector<1x1xf32>
      %142 = arith.maximumf %140, %141 : vector<1x1xf32>
      %cst_57 = arith.constant 9.99999974E-6 : f32
      %143 = vector.broadcast %cst_57 : f32 to vector<1x1xf32>
      %144 = arith.addf %142, %143 : vector<1x1xf32>
      %145 = math.rsqrt %144 : vector<1x1xf32>
      %c12_i32_58 = arith.constant 12 : i32
      %146 = vector.broadcast %c12_i32_58 : i32 to vector<1x128xi32>
      %147 = arith.cmpi sge, %42, %146 : vector<1x128xi32>
      %c16_i32 = arith.constant 16 : i32
      %148 = vector.broadcast %c16_i32 : i32 to vector<1x128xi32>
      %149 = arith.cmpi slt, %42, %148 : vector<1x128xi32>
      %150 = arith.andi %147, %149 : vector<1x128xi1>
      %151 = vector.shape_cast %133 : vector<1x1xf32> to vector<1x1xf32>
      %152 = vector.broadcast %151 : vector<1x1xf32> to vector<1x128xf32>
      %153 = arith.select %150, %152, %125 : vector<1x128xi1>, vector<1x128xf32>
      %154 = vector.shape_cast %145 : vector<1x1xf32> to vector<1x1xf32>
      %155 = vector.broadcast %154 : vector<1x1xf32> to vector<1x128xf32>
      %156 = arith.select %150, %155, %128 : vector<1x128xi1>, vector<1x128xf32>
      %c0_59 = arith.constant 0 : index
      %c0_60 = arith.constant 0 : index
      %157 = vector.load %arg5[%c0_59, %c0_60] : memref<1x128xf32, #tpu.memory_space<vmem>>, vector<1x128xf32>
      %158 = arith.mulf %156, %157 : vector<1x128xf32>
      %c0_61 = arith.constant 0 : index
      %c0_62 = arith.constant 0 : index
      %159 = vector.load %arg6[%c0_61, %c0_62] : memref<1x128xf32, #tpu.memory_space<vmem>>, vector<1x128xf32>
      %160 = arith.subf %27, %153 : vector<1x128xf32>
      %161 = arith.mulf %160, %158 : vector<1x128xf32>
      %162 = arith.addf %159, %161 : vector<1x128xf32>
      %c0_63 = arith.constant 0 : index
      %c0_64 = arith.constant 0 : index
      %c0_65 = arith.constant 0 : index
      %163 = vector.load %arg7[%c0_63, %c0_64, %c0_65] : memref<1x256x128xf32, #tpu.memory_space<vmem>>, vector<1x128x128xf32>
      %164 = vector.shape_cast %163 : vector<1x128x128xf32> to vector<128x128xf32>
      %165 = vector.broadcast %158 : vector<1x128xf32> to vector<128x128xf32>
      %166 = arith.mulf %164, %165 : vector<128x128xf32>
      %167 = vector.broadcast %162 : vector<1x128xf32> to vector<128x128xf32>
      %168 = arith.addf %166, %167 : vector<128x128xf32>
      %cst_66 = arith.constant 0.000000e+00 : f32
      %169 = vector.broadcast %cst_66 : f32 to vector<128x128xf32>
      %170 = arith.maximumf %168, %169 : vector<128x128xf32>
      %c0_67 = arith.constant 0 : index
      %c0_68 = arith.constant 0 : index
      %c0_69 = arith.constant 0 : index
      %171 = vector.load %arg7[%c0_67, %c0_68, %c0_69] : memref<1x256x128xf32, #tpu.memory_space<vmem>>, vector<1x128x128xf32>
      %172 = vector.shape_cast %171 : vector<1x128x128xf32> to vector<128x128xf32>
      %173 = vector.shape_cast %170 : vector<128x128xf32> to vector<1x128x128xf32>
      tpu.vector_store %arg7[%c0_67, %c0_68, %c0_69], %173 {strides = array<i32>} : memref<1x256x128xf32, #tpu.memory_space<vmem>>, vector<1x128x128xf32>,
      %c0_70 = arith.constant 0 : index
      %c128 = arith.constant 128 : index
      %c0_71 = arith.constant 0 : index
      %174 = vector.load %arg7[%c0_70, %c128, %c0_71] : memref<1x256x128xf32, #tpu.memory_space<vmem>>, vector<1x128x128xf32>
      %175 = vector.shape_cast %174 : vector<1x128x128xf32> to vector<128x128xf32>
      %176 = vector.broadcast %158 : vector<1x128xf32> to vector<128x128xf32>
      %177 = arith.mulf %175, %176 : vector<128x128xf32>
      %178 = vector.broadcast %162 : vector<1x128xf32> to vector<128x128xf32>
      %179 = arith.addf %177, %178 : vector<128x128xf32>
      %cst_72 = arith.constant 0.000000e+00 : f32
      %180 = vector.broadcast %cst_72 : f32 to vector<128x128xf32>
      %181 = arith.maximumf %179, %180 : vector<128x128xf32>
      %c0_73 = arith.constant 0 : index
      %c128_74 = arith.constant 128 : index
      %c0_75 = arith.constant 0 : index
      %182 = vector.load %arg7[%c0_73, %c128_74, %c0_75] : memref<1x256x128xf32, #tpu.memory_space<vmem>>, vector<1x128x128xf32>
      %183 = vector.shape_cast %182 : vector<1x128x128xf32> to vector<128x128xf32>
      %184 = vector.shape_cast %181 : vector<128x128xf32> to vector<1x128x128xf32>
      tpu.vector_store %arg7[%c0_73, %c128_74, %c0_75], %184 {strides = array<i32>} : memref<1x256x128xf32, #tpu.memory_space<vmem>>, vector<1x128x128xf32>,
    } else {
    }
    return
  }
  func.func @transform_0(%arg0: i32, %arg1: i32) -> (i32, i32, i32) {
    %c0_i32 = arith.constant 0 : i32
    %c0_i32_0 = arith.constant 0 : i32
    return %arg0, %arg1, %c0_i32 : i32, i32, i32
  }
  func.func @transform_1(%arg0: i32, %arg1: i32) -> (i32, i32) {
    %c0_i32 = arith.constant 0 : i32
    %c0_i32_0 = arith.constant 0 : i32
    %c0_i32_1 = arith.constant 0 : i32
    return %c0_i32, %c0_i32_0 : i32, i32
  }
  func.func @transform_2(%arg0: i32, %arg1: i32) -> (i32, i32) {
    %c0_i32 = arith.constant 0 : i32
    %c0_i32_0 = arith.constant 0 : i32
    %c0_i32_1 = arith.constant 0 : i32
    return %c0_i32, %c0_i32_0 : i32, i32
  }
  func.func @transform_3(%arg0: i32, %arg1: i32) -> (i32, i32) {
    %c0_i32 = arith.constant 0 : i32
    %c0_i32_0 = arith.constant 0 : i32
    %c0_i32_1 = arith.constant 0 : i32
    return %c0_i32, %c0_i32_0 : i32, i32
  }
  func.func @transform_4(%arg0: i32, %arg1: i32) -> (i32, i32) {
    %c0_i32 = arith.constant 0 : i32
    %c0_i32_0 = arith.constant 0 : i32
    %c0_i32_1 = arith.constant 0 : i32
    return %c0_i32, %c0_i32_0 : i32, i32
  }
  func.func @transform_5(%arg0: i32, %arg1: i32) -> (i32, i32, i32) {
    %c0_i32 = arith.constant 0 : i32
    %c0_i32_0 = arith.constant 0 : i32
    %c0_i32_1 = arith.constant 0 : i32
    return %arg0, %c0_i32, %c0_i32_0 : i32, i32, i32
  }
}

</mosaic_0001>

<bundles_post_ra>
// kernel: tpu_custom_call.1
= control target key start
LH: loop header
LB: loop body
LE: loop exit
PB: predicated region body
PF: predicated region fallthrough
CT: control target
= control target key end

     0   :  { %10 = vsyncpa [#allocation5], 0  ;;  %s1618_s0 = inlined_call_operand.vmem [shape: bf16[2,256,36], index: 0, kind: input, shape index: {}]   ;;  %s1619_s1 = inlined_call_operand.vmem [shape: bf16[36,128], index: 1, kind: input, shape index: {}]   ;;  %s1620_s2 = inlined_call_operand.vmem [shape: f32[1,128], index: 2, kind: input, shape index: {}]   ;;  %s1621_s3 = inlined_call_operand.vmem [shape: f32[1,128], index: 3, kind: input, shape index: {}]   ;;  %s1622_s4 = inlined_call_operand.vmem [shape: f32[1,128], index: 4, kind: input, shape index: {}]   ;;  %s1623_s5 = inlined_call_operand.hbm [shape: f32[2,256,128], index: 5, kind: output, shape index: {}]  }
   0x1   :  { %12 = vsyncpa [#allocation5 + $0x1], 0  ;;  %s1237_s18 = smov 0   ;;  %s1239_s19 = smov 0  }
   0x2   :  { %s1241_s20 = smov 0   ;;  %s1243_s21 = smov 0  }
   0x3   :  { %s1245_s22 = smov 0   ;;  %s1247_s23 = smov 0  }
   0x4   :  { %s1249_s24 = smov 0   ;;  %s1251_s25 = smov 0  }
   0x5 LB: > { %s930_s26 = sadd.s32 4294967295, %s1198_s25   ;;  %s931_s27 = sadd.s32 4294967294, %s1198_s25   ;;  %s1198_s25 = sphi %s1251_s25, %s18_s25   ;;  %s1194_s24 = sphi %s1249_s24, %s1636_s24   ;;  %s1190_s23 = sphi %s1247_s23, %s1635_s23   ;;  %s1186_s22 = sphi %s1245_s22, %s1634_s22   ;;  %s1182_s21 = sphi %s1243_s21, %s1633_s21   ;;  %s1178_s20 = sphi %s1241_s20, %s1632_s20   ;;  %s1174_s19 = sphi %s1239_s19, %s1631_s19   ;;  %s1170_s18 = sphi %s1237_s18, %s1630_s18  }
   0x6   : > { %s27_s28 = sadd.s32 1, %s1190_s23  ;;  %s30_s29 = sadd.s32 1, %s1194_s24 }
   0x7   : > { %p28_p0 = scmp.ge.s32.totalorder %s27_s28, 2  ;;  %p159_p1 = scmp.ne.s32.totalorder %s1178_s20, %s1174_s19 }
   0x8   : > { %p160_p2 = scmp.eq.s32.totalorder %s930_s26, 3  ;;  %p165_p4 = scmp.ne.s32.totalorder %s1174_s19, %s1170_s18 }
   0x9   : > { %s1638_s28 = smov (%p28_p0, %s27_s28), 0  ;;  %s1640_s29 = smov (!%p28_p0, %s30_s29), %s1194_s24 }
   0xa   : > { %p1286_p3 = por %p160_p2, %p159_p1  ;;  %p32_p5 = scmp.ge.s32.totalorder %s1640_s29, 2 }
   0xb   : > { %p166_p6 = scmp.eq.s32.totalorder %s931_s27, 3  ;;  %p934_p7 = scmp.ge.s32.totalorder %s1198_s25, 1 }
   0xc   : > { %p209_p8 = scmp.lt.s32.totalorder %s1198_s25, 5  ;;  %s1642_s29 = smov (%p32_p5, %s1640_s29), 0 }
   0xd   : > { %p1296_p9 = por %p166_p6, %p165_p4  ;;  %s146_s7 = ssub.s32 %s1194_s24, %s1642_s29 }
   0xe   : > { %p210_p10 = pnand %p934_p7, %p209_p8  ;;  %s149_s8 = sadd.s32 1, %s1178_s20 }
   0xf   : > { %p147_p11 = scmp.eq.s32.totalorder %s146_s7, 0  ;;  %s1624_s10 = sand.u32 (!%p210_p10), 1, %s1174_s19  }
  0x10   : > { %213 = sbr.rel (%p210_p10) target bundleno = 667 (0x29b), region = 40  ;;  %s936_s11 = sshll.u32 (!%p210_p10), %s1182_s21, 4 }
  0x11   : > { %s1304_s9 = scalar_select %p147_p11, %s1178_s20, %s149_s8  }
  0x12   : > { %s935_s12 = sshll.u32 (!%p210_p10), %s1624_s10, 8  ;;  %p242_p12 = scmp.lt.s32.totalorder (!%p210_p10), %s1186_s22, 1 }
  0x13   : > { %p244_p13 = scmp.lt.s32.totalorder (!%p210_p10), %s936_s11, 31  ;;  %s1317_s7 = scalar_lea.vmem (!%p210_p10), [#allocation4], %s935_s12 }
  0x14   : > { %p939_p0 = scmp.ne.s32.totalorder (!%p210_p10), %s1182_s21, 0 }
  0x17   : > { %s243_s13 = scalar_select %p242_p12, %s1186_s22, 1 }
  0x18   : > { %s1644_s11 = smov (!%p244_p13, %s936_s11), 31  ;;  %255 = sbr.rel (%p939_p0) target bundleno = 31 (0x1f), region = 44 }
  0x19   : > { %s937_s14 = sshll.u32 %s243_s13, 5  ;;  %v1200_v0 = vmov (!%p939_p0), 0.0  }
  0x1a   : > { %s247_s15 = sadd.s32 %s937_s14, %s1644_s11  ;;  %256 = vst [vmem:[#allocation2] sm:$0x1] (!%p939_p0), %v1200_v0  ;;  %257 = vst [vmem:[#allocation3] sm:$0x1] (!%p939_p0), %v1200_v0 }
  0x1b   : > { %s938_s16 = sshll.u32 %s247_s15, 2 }
  0x1c   : > { %s1315_s27 = scalar_lea.vmem %s1618_s0, %s938_s16 }
  0x1f PF: > { %v1085_v1 = vld [vmem:[%s1619_s1] sm:$0xff]   ;;  %v1086_v2 = vld [vmem:[%s1619_s1 + $0x8] sm:$0xff]   ;;  %vm334_vm0 = vcmask 293888   ;;  %v1087_v3 = vld [vmem:[%s1619_s1 + $0x10] ss:$0 sps:$4 sm:$0x33]  }
  0x20   : > { %978 = vmatprep.subr.bf16.mxu0 %v1085_v1  ;;  %v1088_v4 = vld [vmem:[%s1315_s27] sm:$0xff]   ;;  %1000 = vmatprep.subr.bf16.mxu1 %v1085_v1  ;;  %vm359_vm1 = vcmask 1041408   ;;  %v1089_v7 = vld [vmem:[%s1315_s27 + $0x8] sm:$0xff]   ;;  %v1090_v9 = vld [vmem:[%s1315_s27 + $0x10] sm:$0xff]   ;;  %s959_s10 = sshll.u32 %s1182_s21, 7  ;;  %p960_p1 = scmp.ne.s32.totalorder %s1182_s21, 1 }
  0x21   : > { %979 = vmatpush3.bf16.msra.mxu0 %v1085_v1  ;;  %1003 = vmatpush3.bf16.msra.mxu1 %v1085_v1  ;;  %v1092_v5 = vld [vmem:[%s1315_s27 + $0x20] sm:$0xff]   ;;  %v361_v6 = vsel %vm359_vm1, %v1087_v3, 0  ;;  %v1093_v8 = vld [vmem:[%s1315_s27 + $0x28] sm:$0xff]   ;;  %v1094_v10 = vld [vmem:[%s1315_s27 + $0x30] sm:$0xff]   ;;  %s1347_s15 = scalar_lea.vmem %s1317_s7, %s959_s10 [#allocation4]  ;;  %s1201_s21 = smov (!%p960_p1), 116   ;;  %vm558_vm2 = vcmask (!%p960_p1), 24576  }
  0x22   : > { %980 = vmatprep.subr.bf16.mxu0 %v1086_v2  ;;  %984 = vmatprep.mubr.msk.bf16.mxu0 %vm334_vm0, %v1088_v4  ;;  %v1091_v11 = vld [vmem:[%s1315_s27 + $0x18] sm:$0xff]   ;;  %s1202_s26 = smov (!%p960_p1), 124  }
  0x23   : > { %1001 = vmatprep.subr.bf16.mxu1 %v1086_v2  ;;  %992 = vmatprep.mubr.msk.bf16.mxu1 %vm334_vm0, %v1092_v5  ;;  %v1095_v12 = vld [vmem:[%s1315_s27 + $0x38] sm:$0xff]   ;;  %s1203_s27 = smov (!%p960_p1), 120  }
  0x25   : > { %981 = vmatpush3.bf16.msra.mxu0 %v1086_v2  ;;  %1004 = vmatpush3.bf16.msra.mxu1 %v1086_v2 }
  0x26   : > { %1006 = vmatprep.subr.msk.bf16.mxu0 %vm359_vm1, %v1087_v3  ;;  %1007 = vmatprep.subr.msk.bf16.mxu1 %vm359_vm1, %v1087_v3 }
  0x29   : > { %983 = vmatpush3.bf16.msra.mxu0 %v361_v6  ;;  %1005 = vmatpush3.bf16.msra.mxu1 %v361_v6 }
  0x2c   : > { %985 = vmatmul.mubr.msk.bf16.vlgmr.msra.gmra.mrb[0].mxu0 %vm334_vm0, %v1089_v7  ;;  %993 = vmatmul.mubr.msk.bf16.vlgmr.msra.gmra.mrb[0].mxu1 %vm334_vm0, %v1093_v8 }
  0x2d   : > { %988 = vmatprep.mubr.msk.bf16.mxu0 %vm334_vm0, %v1090_v9  ;;  %996 = vmatprep.mubr.msk.bf16.mxu1 %vm334_vm0, %v1094_v10 }
  0x34   : > { %989 = vmatmul.mubr.msk.bf16.gmra.mrb[4].mxu0 %vm334_vm0, %v1091_v11  ;;  %997 = vmatmul.mubr.msk.bf16.gmra.mrb[4].mxu1 %vm334_vm0, %v1095_v12 }
  0xff   : > { %v986_v13 = vpop.f32.mrb[0].mxu0  ;;  %v994_v14 = vpop.f32.mrb[0].mxu1 }
 0x100   : > { %528 = vst [vmem:[%s1347_s15 + $0x10] sm:$0xff] %v986_v13  ;;  %v397_v15 = vpop.f32.mrb[1].mxu0  ;;  %536 = vst [vmem:[%s1347_s15 + $0x50] sm:$0xff] %v994_v14  ;;  %v429_v16 = vpop.f32.mrb[1].mxu1  ;;  %v487_v24 = vmul.f32 %v986_v13, %v986_v13  ;;  %v495_v56 = vmul.f32 %v994_v14, %v994_v14 }
 0x101   : > { %526 = vst [vmem:[%s1347_s15] sm:$0xff] %v397_v15  ;;  %v987_v17 = vpop.f32.mrb[2].mxu0  ;;  %534 = vst [vmem:[%s1347_s15 + $0x40] sm:$0xff] %v429_v16  ;;  %v995_v18 = vpop.f32.mrb[2].mxu1  ;;  %v485_v21 = vmul.f32 %v397_v15, %v397_v15  ;;  %v493_v50 = vmul.f32 %v429_v16, %v429_v16 }
 0x102   : > { %529 = vst [vmem:[%s1347_s15 + $0x18] sm:$0xff] %v987_v17  ;;  %v400_v19 = vpop.f32.mrb[3].mxu0  ;;  %537 = vst [vmem:[%s1347_s15 + $0x58] sm:$0xff] %v995_v18  ;;  %v432_v20 = vpop.f32.mrb[3].mxu1  ;;  %v488_v27 = vmul.f32 %v987_v17, %v987_v17  ;;  %v496_v59 = vmul.f32 %v995_v18, %v995_v18 }
 0x103   : > { %v461_v22 = vadd.f32 %v400_v19, %v397_v15  ;;  %v486_v23 = vmul.f32 %v400_v19, %v400_v19  ;;  %527 = vst [vmem:[%s1347_s15 + $0x8] sm:$0xff] %v400_v19  ;;  %535 = vst [vmem:[%s1347_s15 + $0x48] sm:$0xff] %v432_v20  ;;  %v494_v55 = vmul.f32 %v432_v20, %v432_v20 }
 0x105   : > { %v462_v25 = vadd.f32 %v986_v13, %v461_v22  ;;  %v501_v26 = vadd.f32 %v486_v23, %v485_v21  ;;  %v484_v23 = vld [vmem:[#allocation3] sm:$0x1] }
 0x107   : > { %v502_v28 = vadd.f32 %v501_v26, %v487_v24  ;;  %v990_v29 = vpop.f32.mrb[4].mxu0  ;;  %v463_v30 = vadd.f32 %v987_v17, %v462_v25  ;;  %v998_v31 = vpop.f32.mrb[4].mxu1 }
 0x108   : > { %532 = vst [vmem:[%s1347_s15 + $0x30] sm:$0xff] %v990_v29  ;;  %v413_v32 = vpop.f32.mrb[5].mxu0  ;;  %540 = vst [vmem:[%s1347_s15 + $0x70] sm:$0xff] %v998_v31  ;;  %v445_v33 = vpop.f32.mrb[5].mxu1  ;;  %v491_v44 = vmul.f32 %v990_v29, %v990_v29  ;;  %v499_v4 = vmul.f32 %v998_v31, %v998_v31 }
 0x109   : > { %v464_v34 = vadd.f32 %v463_v30, %v413_v32  ;;  %v489_v35 = vmul.f32 %v413_v32, %v413_v32  ;;  %v503_v36 = vadd.f32 %v502_v28, %v488_v27  ;;  %530 = vst [vmem:[%s1347_s15 + $0x20] sm:$0xff] %v413_v32  ;;  %v991_v37 = vpop.f32.mrb[6].mxu0  ;;  %538 = vst [vmem:[%s1347_s15 + $0x60] sm:$0xff] %v445_v33  ;;  %v999_v38 = vpop.f32.mrb[6].mxu1  ;;  %v1369_v27 = vld [vmem:[%s1620_s2] sm:$0x1] (!%p960_p1) }
 0x10a   : > { %533 = vst [vmem:[%s1347_s15 + $0x38] sm:$0xff] %v991_v37  ;;  %v416_v39 = vpop.f32.mrb[7].mxu0  ;;  %541 = vst [vmem:[%s1347_s15 + $0x78] sm:$0xff] %v999_v38  ;;  %v448_v40 = vpop.f32.mrb[7].mxu1  ;;  %v492_v47 = vmul.f32 %v991_v37, %v991_v37  ;;  %v497_v62 = vmul.f32 %v445_v33, %v445_v33  ;;  %v500_v7 = vmul.f32 %v999_v38, %v999_v38  ;;  %v548_v30 = vmul.f32 (!%p960_p1), 256.0, %v1369_v27 }
 0x10b   : > { %v504_v41 = vadd.f32 %v503_v36, %v489_v35  ;;  %v465_v42 = vadd.f32 %v464_v34, %v416_v39  ;;  %v490_v43 = vmul.f32 %v416_v39, %v416_v39  ;;  %531 = vst [vmem:[%s1347_s15 + $0x28] sm:$0xff] %v416_v39  ;;  %539 = vst [vmem:[%s1347_s15 + $0x68] sm:$0xff] %v448_v40 }
 0x10c   : > { %v498_v3 = vmul.f32 %v448_v40, %v448_v40  ;;  %v554_v36 = vmul.f32 (!%p960_p1), %v548_v30, %v1369_v27 }
 0x10d   : > { %v466_v45 = vadd.f32 %v990_v29, %v465_v42  ;;  %v505_v46 = vadd.f32 %v504_v41, %v490_v43  ;;  %v556_v29 = vlaneseq (!%p960_p1) }
 0x10f   : > { %v506_v48 = vadd.f32 %v505_v46, %v491_v44  ;;  %v467_v49 = vadd.f32 %v991_v37, %v466_v45  ;;  %v579_v32 = vshrl.u32 (!%p960_p1), %v556_v29, 7 }
 0x111   : > { %v468_v51 = vadd.f32 %v467_v49, %v429_v16  ;;  %v507_v52 = vadd.f32 %v506_v48, %v492_v47  ;;  %v1375_v37 = vsub.s32 (!%p960_p1), 0, %v579_v32 }
 0x113   : > { %v508_v53 = vadd.f32 %v507_v52, %v493_v50  ;;  %v469_v54 = vadd.f32 %v468_v51, %v432_v20  ;;  %v460_v20 = vld [vmem:[#allocation2] sm:$0x1] }
 0x115   : > { %v470_v57 = vadd.f32 %v994_v14, %v469_v54  ;;  %v509_v58 = vadd.f32 %v508_v53, %v494_v55 }
 0x117   : > { %v510_v60 = vadd.f32 %v509_v58, %v495_v56  ;;  %v471_v61 = vadd.f32 %v995_v18, %v470_v57 }
 0x119   : > { %v472_v63 = vadd.f32 %v471_v61, %v445_v33  ;;  %v511_v0 = vadd.f32 %v510_v60, %v496_v59 }
 0x11b   : > { %v512_v1 = vadd.f32 %v511_v0, %v497_v62  ;;  %v473_v2 = vadd.f32 %v472_v63, %v448_v40 }
 0x11d   : > { %v474_v5 = vadd.f32 %v998_v31, %v473_v2  ;;  %v513_v6 = vadd.f32 %v512_v1, %v498_v3  ;;  %v551_v31 = vmul.f32 (!%p960_p1), 2.0, %v1369_v27 }
 0x11f   : > { %v475_v8 = vadd.f32 %v999_v38, %v474_v5  ;;  %v514_v9 = vadd.f32 %v513_v6, %v499_v4 }
 0x121   : > { %v476_v10 = vrot.slane %v475_v8, 4  ;;  %v515_v11 = vadd.f32 %v514_v9, %v500_v7 }
 0x123   : > { %v477_v12 = vadd.f32 %v476_v10, %v475_v8  ;;  %v516_v13 = vrot.slane %v515_v11, 4 }
 0x125   : > { %v478_v14 = vrot.slane %v477_v12, 2  ;;  %v517_v15 = vadd.f32 %v516_v13, %v515_v11 }
 0x127   : > { %v479_v16 = vadd.f32 %v478_v14, %v477_v12  ;;  %v518_v17 = vrot.slane %v517_v15, 2 }
 0x129   : > { %v480_v18 = vrot.slane %v479_v16, 1  ;;  %v519_v19 = vadd.f32 %v518_v17, %v517_v15 }
 0x12b   : > { %v481_v21 = vadd.f32 %v480_v18, %v479_v16  ;;  %v520_v22 = vrot.slane %v519_v19, 1  ;;  %545 = sbr.rel (%p960_p1) target bundleno = 641 (0x281), region = 48 }
 0x12d   : > { %v482_v24 = vadd.f32 %v481_v21, %v460_v20  ;;  %v521_v25 = vadd.f32 %v520_v22, %v519_v19 }
 0x12f   : > { %483 = vst [vmem:[#allocation2] sm:$0x1] %v482_v24  ;;  %v522_v26 = vadd.f32 %v521_v25, %v484_v23  ;;  %v557_v24 = vand.u32 (!%p960_p1), 127, %v556_v29 }
 0x131   : > { %523 = vst [vmem:[#allocation3] sm:$0x1] %v522_v26  ;;  %vm606_vm3 = vcmp.ge.s32.totalorder (!%p960_p1), %v557_v24, 4  ;;  %vm607_vm4 = vcmp.lt.s32.totalorder (!%p960_p1), %v557_v24, 8  ;;  %vm630_vm5 = vcmp.ge.s32.totalorder (!%p960_p1), %v557_v24, 8  ;;  %vm631_vm6 = vcmp.lt.s32.totalorder (!%p960_p1), %v557_v24, 12 }
 0x132   : > { %vm573_vm7 = vcmp.lt.s32.totalorder %v557_v24, 4  ;;  %vm654_vm8 = vcmp.ge.s32.totalorder %v557_v24, 12  ;;  %vm655_vm9 = vcmp.lt.s32.totalorder %v557_v24, 16  ;;  %vm608_vm10 = vmand %vm606_vm3, %vm607_vm4 }
 0x133   : > { %vm632_vm11 = vmand %vm630_vm5, %vm631_vm6 }
 0x134   : > { %vm1388_vm12 = vmand %vm654_vm8, %vm655_vm9 }
 0x136   : > { %v547_v28 = vld [vmem:[#allocation2] sm:$0x1] }
 0x137   : > { %v549_v34 = vadd.f32 %v548_v30, %v547_v28  ;;  %v552_v35 = vmul.f32 %v551_v31, %v547_v28 }
 0x138   : > { %v550_v33 = vld [vmem:[#allocation3] sm:$0x1] }
 0x139   : > { %v553_v38 = vadd.f32 %v552_v35, %v550_v33  ;;  %v581_v39 = vrot.slane %v549_v34, %v1375_v37  ;;  %v559_v42 = vsel %vm558_vm2, %v549_v34, 0.0 }
 0x13b   : > { %v555_v40 = vadd.f32 %v554_v36, %v553_v38  ;;  %635 = vrot.lane.b32.xlu1 %v581_v39, %s1201_s21  ;;  %582 = vrot.lane.b32.xlu0 %v581_v39, %s1202_s26  ;;  %v659_v36 = vld [vmem:[%s1621_s3] sm:$0x1] }
 0x13d   : > { %v593_v41 = vrot.slane %v555_v40, %v1375_v37  ;;  %v563_v43 = vsel %vm558_vm2, %v555_v40, 0.0  ;;  %v661_v40 = vld [vmem:[%s1622_s4] sm:$0x1] }
 0x13f   : > { %594 = vrot.lane.b32.xlu1 %v593_v41, %s1202_s26  ;;  %611 = vrot.lane.b32.xlu0 %v581_v39, %s1203_s27 }
 0x143   : > { %618 = vrot.lane.b32.xlu0 %v593_v41, %s1203_s27  ;;  %642 = vrot.lane.b32.xlu1 %v593_v41, %s1201_s21  ;;  %v665_v41 = vld [vmem:[%s1317_s7] sm:$0xff] }
 0x162   : > { %560 = vadd.xlane.f32.xlu0 %v559_v42 }
 0x167   : > { %564 = vadd.xlane.f32.xlu1 %v563_v43 }
 0x1ad   : > { %v636_v44 = vpop.permute.xlu1 %635  ;;  %v583_v45 = vpop.permute.xlu0 %582 }
 0x1ae   : > { %v585_v46 = vsel %vm558_vm2, %v583_v45, 0.0  ;;  %v638_v53 = vsel %vm558_vm2, %v636_v44, 0.0  ;;  %v666_v44 = vld [vmem:[%s1317_s7 + $0x8] sm:$0xff]  ;;  %v667_v45 = vld [vmem:[%s1317_s7 + $0x10] sm:$0xff] }
 0x1af   : > { %586 = vadd.xlane.f32.xlu0 %v585_v46  ;;  %v668_v46 = vld [vmem:[%s1317_s7 + $0x18] sm:$0xff] }
 0x1b1   : > { %v595_v47 = vpop.permute.xlu1 %594  ;;  %v612_v48 = vpop.permute.xlu0 %611 }
 0x1b2   : > { %v614_v49 = vsel %vm558_vm2, %v612_v48, 0.0  ;;  %v597_v50 = vsel %vm558_vm2, %v595_v47, 0.0  ;;  %v669_v48 = vld [vmem:[%s1317_s7 + $0x20] sm:$0xff] }
 0x1b3   : > { %615 = vadd.xlane.f32.xlu1 %v614_v49  ;;  %598 = vadd.xlane.f32.xlu0 %v597_v50  ;;  %v670_v49 = vld [vmem:[%s1317_s7 + $0x28] sm:$0xff]  ;;  %v671_v50 = vld [vmem:[%s1317_s7 + $0x30] sm:$0xff] }
 0x1b5   : > { %v619_v51 = vpop.permute.xlu0 %618  ;;  %v643_v52 = vpop.permute.xlu1 %642 }
 0x1b6   : > { %v621_v54 = vsel %vm558_vm2, %v619_v51, 0.0  ;;  %v645_v55 = vsel %vm558_vm2, %v643_v52, 0.0  ;;  %v672_v51 = vld [vmem:[%s1317_s7 + $0x38] sm:$0xff]  ;;  %v673_v52 = vld [vmem:[%s1317_s7 + $0x40] sm:$0xff] }
 0x1b7   : > { %639 = vadd.xlane.f32.xlu1 %v638_v53  ;;  %622 = vadd.xlane.f32.xlu0 %v621_v54  ;;  %v674_v53 = vld [vmem:[%s1317_s7 + $0x48] sm:$0xff] }
 0x1bb   : > { %646 = vadd.xlane.f32.xlu0 %v645_v55 }
 0x1ef   : > { %v561_v56 = vpop.xlane.xlu0 %560 }
 0x1f0   : > { %v562_v57 = vmul.f32 0.0009765625, %v561_v56  ;;  %v676_v56 = vld [vmem:[%s1317_s7 + $0x58] sm:$0xff] }
 0x1f2   : > { %v567_v59 = vmul.f32 %v562_v57, %v562_v57  ;;  %v575_v28 = vsel %vm573_vm7, %v562_v57, 0.0  ;;  %v677_v57 = vld [vmem:[%s1317_s7 + $0x60] sm:$0xff] }
 0x1f4   : > { %v565_v58 = vpop.xlane.xlu1 %564 }
 0x1f5   : > { %v566_v60 = vmul.f32 0.0009765625, %v565_v58  ;;  %v678_v58 = vld [vmem:[%s1317_s7 + $0x68] sm:$0xff] }
 0x1f7   : > { %v568_v63 = vsub.f32 %v566_v60, %v567_v59  ;;  %v679_v59 = vld [vmem:[%s1317_s7 + $0x70] sm:$0xff]  ;;  %v680_v60 = vld [vmem:[%s1317_s7 + $0x78] sm:$0xff] }
 0x1f9   : > { %v569_v6 = vmax.f32 %v568_v63, 0.0 }
 0x1fb   : > { %v570_v14 = vadd.f32 1e-05, %v569_v6 }
 0x1fd   : > { %1096 = vrsqrt.f32 %v570_v14 }
 0x207   : > { %v1097_v25 = vpop.eup %1096 }
 0x208   : > { %v576_v32 = vsel %vm573_vm7, %v1097_v25, 0.0 }
 0x23c   : > { %v587_v61 = vpop.xlane.xlu0 %586 }
 0x23d   : > { %v588_v62 = vmul.f32 0.0009765625, %v587_v61 }
 0x23f   : > { %v601_v2 = vmul.f32 %v588_v62, %v588_v62  ;;  %v609_v31 = vsel %vm608_vm10, %v588_v62, %v575_v28 }
 0x240   : > { %v616_v0 = vpop.xlane.xlu1 %615  ;;  %v599_v1 = vpop.xlane.xlu0 %598 }
 0x241   : > { %v617_v3 = vmul.f32 0.0009765625, %v616_v0  ;;  %v600_v4 = vmul.f32 0.0009765625, %v599_v1  ;;  %v755_v1 = vld [vmem:[%s1317_s7 + $0x80] sm:$0xff] }
 0x243   : > { %v602_v5 = vsub.f32 %v600_v4, %v601_v2  ;;  %v625_v9 = vmul.f32 %v617_v3, %v617_v3  ;;  %v633_v33 = vsel %vm632_vm11, %v617_v3, %v609_v31  ;;  %v756_v2 = vld [vmem:[%s1317_s7 + $0x88] sm:$0xff]  ;;  %v757_v3 = vld [vmem:[%s1317_s7 + $0x90] sm:$0xff] }
 0x244   : > { %v640_v7 = vpop.xlane.xlu1 %639  ;;  %v623_v8 = vpop.xlane.xlu0 %622 }
 0x245   : > { %v603_v10 = vmax.f32 %v602_v5, 0.0  ;;  %v641_v11 = vmul.f32 0.0009765625, %v640_v7  ;;  %v624_v12 = vmul.f32 0.0009765625, %v623_v8  ;;  %v758_v8 = vld [vmem:[%s1317_s7 + $0x98] sm:$0xff] }
 0x247   : > { %v626_v13 = vsub.f32 %v624_v12, %v625_v9  ;;  %v604_v16 = vadd.f32 1e-05, %v603_v10  ;;  %v649_v17 = vmul.f32 %v641_v11, %v641_v11  ;;  %v657_v35 = vsel %vm1388_vm12, %v641_v11, %v633_v33  ;;  %v759_v9 = vld [vmem:[%s1317_s7 + $0xa0] sm:$0xff]  ;;  %v760_v10 = vld [vmem:[%s1317_s7 + $0xa8] sm:$0xff] }
 0x248   : > { %v647_v15 = vpop.xlane.xlu0 %646  ;;  %v662_v43 = vsub.f32 %v1369_v27, %v657_v35  ;;  %v675_v27 = vld [vmem:[%s1317_s7 + $0x50] sm:$0xff] }
 0x249   : > { %v627_v18 = vmax.f32 %v626_v13, 0.0  ;;  %v648_v19 = vmul.f32 0.0009765625, %v647_v15  ;;  %1098 = vrsqrt.f32 %v604_v16 }
 0x24b   : > { %v628_v20 = vadd.f32 1e-05, %v627_v18  ;;  %v650_v21 = vsub.f32 %v648_v19, %v649_v17 }
 0x24d   : > { %v651_v22 = vmax.f32 %v650_v21, 0.0  ;;  %1100 = vrsqrt.f32 %v628_v20 }
 0x24f   : > { %v652_v23 = vadd.f32 1e-05, %v651_v22 }
 0x251   : > { %1102 = vrsqrt.f32 %v652_v23 }
 0x253   : > { %v1099_v26 = vpop.eup %1098 }
 0x254   : > { %v610_v34 = vsel %vm608_vm10, %v1099_v26, %v576_v32 }
 0x257   : > { %v1101_v29 = vpop.eup %1100 }
 0x258   : > { %v634_v39 = vsel %vm632_vm11, %v1101_v29, %v610_v34 }
 0x25b   : > { %v1103_v38 = vpop.eup %1102 }
 0x25c   : > { %v658_v42 = vsel %vm1388_vm12, %v1103_v38, %v634_v39 }
 0x25d   : > { %v660_v47 = vmul.f32 %v659_v36, %v658_v42 }
 0x25f   : > { %v663_v54 = vmul.f32 %v662_v43, %v660_v47  ;;  %v1414_v55 = vrot.slane %v660_v47, %v1375_v37  ;;  %v764_v47 = vld [vmem:[%s1317_s7 + $0xc8] sm:$0xff] }
 0x261   : > { %v664_v61 = vadd.f32 %v663_v54, %v661_v40  ;;  %v685_v62 = vmul.f32 %v1414_v55, %v665_v41  ;;  %v686_v63 = vmul.f32 %v1414_v55, %v666_v44  ;;  %v687_v0 = vmul.f32 %v1414_v55, %v667_v45  ;;  %v761_v40 = vld [vmem:[%s1317_s7 + $0xb0] sm:$0xff]  ;;  %v762_v41 = vld [vmem:[%s1317_s7 + $0xb8] sm:$0xff] }
 0x262   : > { %v688_v4 = vmul.f32 %v1414_v55, %v668_v46  ;;  %v689_v5 = vmul.f32 %v1414_v55, %v669_v48  ;;  %v690_v6 = vmul.f32 %v1414_v55, %v670_v49  ;;  %v691_v7 = vmul.f32 %v1414_v55, %v671_v50  ;;  %v763_v46 = vld [vmem:[%s1317_s7 + $0xc0] sm:$0xff] }
 0x263   : > { %v692_v11 = vmul.f32 %v1414_v55, %v672_v51  ;;  %v693_v12 = vmul.f32 %v1414_v55, %v673_v52  ;;  %v694_v13 = vmul.f32 %v1414_v55, %v674_v53  ;;  %v695_v14 = vmul.f32 %v1414_v55, %v675_v27  ;;  %v765_v52 = vld [vmem:[%s1317_s7 + $0xd0] sm:$0xff]  ;;  %v766_v53 = vld [vmem:[%s1317_s7 + $0xd8] sm:$0xff] }
 0x264   : > { %v696_v15 = vmul.f32 %v1414_v55, %v676_v56  ;;  %v697_v16 = vmul.f32 %v1414_v55, %v677_v57  ;;  %v698_v17 = vmul.f32 %v1414_v55, %v678_v58  ;;  %v699_v18 = vmul.f32 %v1414_v55, %v679_v59  ;;  %v767_v58 = vld [vmem:[%s1317_s7 + $0xe0] sm:$0xff]  ;;  %v768_v59 = vld [vmem:[%s1317_s7 + $0xe8] sm:$0xff] }
 0x265   : > { %v700_v19 = vmul.f32 %v1414_v55, %v680_v60  ;;  %v1445_v20 = vrot.slane %v664_v61, %v1375_v37  ;;  %v1448_v21 = vmul.f32 %v755_v1, %v1414_v55  ;;  %v1451_v22 = vmul.f32 %v756_v2, %v1414_v55  ;;  %v770_v1 = vld [vmem:[%s1317_s7 + $0xf8] sm:$0xff] }
 0x266   : > { %v1454_v23 = vmul.f32 %v757_v3, %v1414_v55  ;;  %v1457_v24 = vmul.f32 %v758_v8, %v1414_v55  ;;  %v1460_v25 = vmul.f32 %v759_v9, %v1414_v55  ;;  %v1463_v37 = vmul.f32 %v760_v10, %v1414_v55 }
 0x267   : > { %v707_v26 = vadd.f32 %v1445_v20, %v685_v62  ;;  %v708_v28 = vadd.f32 %v1445_v20, %v686_v63  ;;  %v709_v30 = vadd.f32 %v1445_v20, %v687_v0  ;;  %v710_v29 = vadd.f32 %v1445_v20, %v688_v4  ;;  %v769_v0 = vld [vmem:[%s1317_s7 + $0xf0] sm:$0xff] }
 0x268   : > { %v711_v31 = vadd.f32 %v1445_v20, %v689_v5  ;;  %v712_v32 = vadd.f32 %v1445_v20, %v690_v6  ;;  %v713_v33 = vadd.f32 %v1445_v20, %v691_v7  ;;  %v714_v34 = vadd.f32 %v1445_v20, %v692_v11 }
 0x269   : > { %v715_v35 = vadd.f32 %v1445_v20, %v693_v12  ;;  %v716_v36 = vadd.f32 %v1445_v20, %v694_v13  ;;  %v717_v38 = vadd.f32 %v1445_v20, %v695_v14  ;;  %v718_v39 = vadd.f32 %v1445_v20, %v696_v15 }
 0x26a   : > { %v719_v42 = vadd.f32 %v1445_v20, %v697_v16  ;;  %v720_v43 = vadd.f32 %v1445_v20, %v698_v17  ;;  %v721_v44 = vadd.f32 %v1445_v20, %v699_v18  ;;  %v722_v45 = vadd.f32 %v1445_v20, %v700_v19 }
 0x26b   : > { %v723_v48 = vmax.f32 %v707_v26, 0.0  ;;  %v724_v49 = vmax.f32 %v708_v28, 0.0  ;;  %v725_v50 = vmax.f32 %v709_v30, 0.0  ;;  %v726_v51 = vmax.f32 %v710_v29, 0.0 }
 0x26c   : > { %v727_v54 = vmax.f32 %v711_v31, 0.0  ;;  %v728_v27 = vmax.f32 %v712_v32, 0.0  ;;  %v729_v56 = vmax.f32 %v713_v33, 0.0  ;;  %v730_v57 = vmax.f32 %v714_v34, 0.0 }
 0x26d   : > { %v731_v60 = vmax.f32 %v715_v35, 0.0  ;;  %v732_v61 = vmax.f32 %v716_v36, 0.0  ;;  %v733_v62 = vmax.f32 %v717_v38, 0.0  ;;  %v734_v63 = vmax.f32 %v718_v39, 0.0  ;;  %739 = vst [vmem:[%s1317_s7] sm:$0xff] %v723_v48  ;;  %740 = vst [vmem:[%s1317_s7 + $0x8] sm:$0xff] %v724_v49 }
 0x26e   : > { %741 = vst [vmem:[%s1317_s7 + $0x10] sm:$0xff] %v725_v50  ;;  %742 = vst [vmem:[%s1317_s7 + $0x18] sm:$0xff] %v726_v51  ;;  %v735_v2 = vmax.f32 %v719_v42, 0.0  ;;  %v736_v3 = vmax.f32 %v720_v43, 0.0  ;;  %v737_v4 = vmax.f32 %v721_v44, 0.0  ;;  %v738_v5 = vmax.f32 %v722_v45, 0.0 }
 0x26f   : > { %743 = vst [vmem:[%s1317_s7 + $0x20] sm:$0xff] %v727_v54  ;;  %744 = vst [vmem:[%s1317_s7 + $0x28] sm:$0xff] %v728_v27  ;;  %v777_v6 = vmul.f32 %v761_v40, %v1414_v55  ;;  %v778_v7 = vmul.f32 %v762_v41, %v1414_v55  ;;  %v779_v8 = vmul.f32 %v763_v46, %v1414_v55 }
 0x270   : > { %745 = vst [vmem:[%s1317_s7 + $0x30] sm:$0xff] %v729_v56  ;;  %746 = vst [vmem:[%s1317_s7 + $0x38] sm:$0xff] %v730_v57  ;;  %v780_v9 = vmul.f32 %v764_v47, %v1414_v55  ;;  %v781_v10 = vmul.f32 %v765_v52, %v1414_v55  ;;  %v782_v11 = vmul.f32 %v766_v53, %v1414_v55 }
 0x271   : > { %747 = vst [vmem:[%s1317_s7 + $0x40] sm:$0xff] %v731_v60  ;;  %748 = vst [vmem:[%s1317_s7 + $0x48] sm:$0xff] %v732_v61  ;;  %v783_v12 = vmul.f32 %v767_v58, %v1414_v55  ;;  %v784_v13 = vmul.f32 %v768_v59, %v1414_v55  ;;  %v785_v14 = vmul.f32 %v769_v0, %v1414_v55 }
 0x272   : > { %749 = vst [vmem:[%s1317_s7 + $0x50] sm:$0xff] %v733_v62  ;;  %750 = vst [vmem:[%s1317_s7 + $0x58] sm:$0xff] %v734_v63  ;;  %v786_v15 = vmul.f32 %v770_v1, %v1414_v55  ;;  %v787_v16 = vadd.f32 %v1448_v21, %v1445_v20  ;;  %v788_v17 = vadd.f32 %v1451_v22, %v1445_v20 }
 0x273   : > { %751 = vst [vmem:[%s1317_s7 + $0x60] sm:$0xff] %v735_v2  ;;  %752 = vst [vmem:[%s1317_s7 + $0x68] sm:$0xff] %v736_v3  ;;  %v789_v18 = vadd.f32 %v1454_v23, %v1445_v20  ;;  %v790_v19 = vadd.f32 %v1457_v24, %v1445_v20  ;;  %v791_v26 = vadd.f32 %v1460_v25, %v1445_v20 }
 0x274   : > { %753 = vst [vmem:[%s1317_s7 + $0x70] sm:$0xff] %v737_v4  ;;  %754 = vst [vmem:[%s1317_s7 + $0x78] sm:$0xff] %v738_v5  ;;  %v792_v28 = vadd.f32 %v1463_v37, %v1445_v20  ;;  %v793_v55 = vadd.f32 %v777_v6, %v1445_v20  ;;  %v794_v30 = vadd.f32 %v778_v7, %v1445_v20  ;;  %v803_v32 = vmax.f32 %v787_v16, 0.0 }
 0x275   : > { %v795_v21 = vadd.f32 %v779_v8, %v1445_v20  ;;  %v796_v22 = vadd.f32 %v780_v9, %v1445_v20  ;;  %v797_v29 = vadd.f32 %v781_v10, %v1445_v20  ;;  %v798_v23 = vadd.f32 %v782_v11, %v1445_v20 }
 0x276   : > { %v799_v24 = vadd.f32 %v783_v12, %v1445_v20  ;;  %v800_v25 = vadd.f32 %v784_v13, %v1445_v20  ;;  %v801_v37 = vadd.f32 %v785_v14, %v1445_v20  ;;  %v802_v31 = vadd.f32 %v786_v15, %v1445_v20  ;;  %819 = vst [vmem:[%s1317_s7 + $0x80] sm:$0xff] %v803_v32 }
 0x277   : > { %v804_v33 = vmax.f32 %v788_v17, 0.0  ;;  %v805_v34 = vmax.f32 %v789_v18, 0.0  ;;  %v806_v35 = vmax.f32 %v790_v19, 0.0  ;;  %v807_v36 = vmax.f32 %v791_v26, 0.0 }
 0x278   : > { %v808_v38 = vmax.f32 %v792_v28, 0.0  ;;  %v809_v39 = vmax.f32 %v793_v55, 0.0  ;;  %v810_v40 = vmax.f32 %v794_v30, 0.0  ;;  %v811_v41 = vmax.f32 %v795_v21, 0.0 }
 0x279   : > { %v812_v42 = vmax.f32 %v796_v22, 0.0  ;;  %820 = vst [vmem:[%s1317_s7 + $0x88] sm:$0xff] %v804_v33  ;;  %v813_v20 = vmax.f32 %v797_v29, 0.0  ;;  %v814_v43 = vmax.f32 %v798_v23, 0.0  ;;  %v815_v44 = vmax.f32 %v799_v24, 0.0  ;;  %821 = vst [vmem:[%s1317_s7 + $0x90] sm:$0xff] %v805_v34 }
 0x27a   : > { %v816_v45 = vmax.f32 %v800_v25, 0.0  ;;  %822 = vst [vmem:[%s1317_s7 + $0x98] sm:$0xff] %v806_v35  ;;  %823 = vst [vmem:[%s1317_s7 + $0xa0] sm:$0xff] %v807_v36  ;;  %v817_v46 = vmax.f32 %v801_v37, 0.0  ;;  %v818_v47 = vmax.f32 %v802_v31, 0.0 }
 0x27b   : > { %824 = vst [vmem:[%s1317_s7 + $0xa8] sm:$0xff] %v808_v38  ;;  %825 = vst [vmem:[%s1317_s7 + $0xb0] sm:$0xff] %v809_v39 }
 0x27c   : > { %826 = vst [vmem:[%s1317_s7 + $0xb8] sm:$0xff] %v810_v40  ;;  %827 = vst [vmem:[%s1317_s7 + $0xc0] sm:$0xff] %v811_v41 }
 0x27d   : > { %828 = vst [vmem:[%s1317_s7 + $0xc8] sm:$0xff] %v812_v42  ;;  %829 = vst [vmem:[%s1317_s7 + $0xd0] sm:$0xff] %v813_v20 }
 0x27e   : > { %830 = vst [vmem:[%s1317_s7 + $0xd8] sm:$0xff] %v814_v43  ;;  %831 = vst [vmem:[%s1317_s7 + $0xe0] sm:$0xff] %v815_v44 }
 0x27f   : > { %832 = vst [vmem:[%s1317_s7 + $0xe8] sm:$0xff] %v816_v45  ;;  %833 = vst [vmem:[%s1317_s7 + $0xf0] sm:$0xff] %v817_v46 }
 0x280   : > { %834 = vst [vmem:[%s1317_s7 + $0xf8] sm:$0xff] %v818_v47 }
 0x281 PF: > { %s966_s14 = sshll.u32 %s1186_s22, 12  ;;  %s849_s17 = sshll.u32 %s1317_s7, 4  ;;  %s1562_s17 = int_to_ptr.vmem [resolvable:$true] %s849_s17 }
 0x282   : > { %s1559_s16 = scalar_lea.hbm %s1623_s5, %s966_s14  ;;  %s1629_s21 = sand.u32 1, %s1174_s19  }
 0x283   : > { %s1566_s26 = scalar_lea.sflag [#allocation5], %s1629_s21  ;;  %s1104_s27 = scalar_lea.vmem %s1562_s17, 4096 }
 0x284   : > { %p1105_p2 = scmp.ne.s32.totalorder %s1562_s17, %s1104_s27  ;;  %s1204_s22 = smov [#allocation4]  }
 0x285   : > { %s1108_s8 = sshll.u32 %s1204_s22, 4  ;;  %s1109_s8 = int_to_ptr.vmem [resolvable:$false] %s1108_s8 }
 0x286   : > { %p1106_p4 = pnand %p1105_p2, %p1286_p3  ;;  %s1110_s11 = scalar_lea.vmem %s1109_s8, 8192 }
 0x287   : > { %p1111_p6 = scmp.lt.s32.totalorder %s1562_s17, %s1109_s8  ;;  %p1112_p7 = scmp.lt.s32.totalorder %s1110_s11, %s1104_s27 }
 0x288   : > { %p1107_p5 = pneg %p1106_p4 }
 0x289   : > { %p1113_p8 = por %p1112_p7, %p1111_p6 }
 0x28b   : > { %p1114_p10 = pnand %p1113_p8, %p1107_p5 }
 0x28d   : > { %1117 = shalt.err (!%p1114_p10)
}
 0x28e   : > { %s1118_s7 = scalar_lea.hbm %s1559_s16, 4096  ;;  %s1122_s14 = scalar_lea.hbm %s1623_s5, 8192 }
 0x28f   : > { %p1119_p11 = scmp.ne.s32.totalorder %s1559_s16, %s1118_s7  ;;  %p1123_p0 = scmp.lt.u32.totalorder %s1559_s16, %s1623_s5 }
 0x290   : > { %p1124_p1 = scmp.lt.u32.totalorder %s1122_s14, %s1118_s7  ;;  %p1126_p4 = scmp.lt.u32.totalorder %s1118_s7, %s1559_s16 }
 0x291   : > { %p1120_p12 = pnand %p1119_p11, %p1286_p3 }
 0x292   : > { %p1125_p2 = por %p1124_p1, %p1123_p0 }
 0x293   : > { %p1121_p13 = pneg %p1120_p12 }
 0x294   : > { %p1127_p5 = por %p1126_p4, %p1125_p2 }
 0x296   : > { %p1128_p6 = pnand %p1127_p5, %p1121_p13 }
 0x298   : > { %1131 = shalt.err (!%p1128_p6)
}
 0x299   : > { %s1205_s21 = smov 128   ;;  %s1206_s27 = smov 8  }
 0x29a   : > { %1008 = dma.vmem_to_hbm [thread:$0]  (%p1286_p3), %s1562_s17, 4096, %s1559_s16, %s1566_s26, %s1205_s21, %s1205_s21, %s1206_s27  }
 0x29b PF: > { %p1014_p7 = scmp.ge.s32.totalorder %s1198_s25, 2  ;;  %s864_s22 = sand.u32 1, %s1170_s18  }
 0x29c   : > { %s865_s8 = scalar_lea.sflag [#allocation5], %s864_s22 }
 0x29d   : > { %p1011_p8 = pnand %p1014_p7, %p1296_p9 }
 0x29f   : > { %1165 = dma.done.wait (!%p1011_p8), %s865_s8, 4096  }
 0x2a0   : > { %1167 = vsyncadd (!%p1011_p8), %s865_s8, 4294963200  ;;  %s18_s25 = sadd.s32 1, %s1198_s25   ;;  %s1630_s18 = smov %s1174_s19 }
 0x2a1   : > { %p15_p10 = scmp.ge.s32.totalorder %s18_s25, 6   ;;  %s1631_s19 = smov %s1178_s20 }
 0x2a2   : > { %s1632_s20 = smov %s1304_s9  ;;  %s1633_s21 = smov %s1190_s23 }
 0x2a3   : > { %s1634_s22 = smov %s1194_s24  ;;  %s1635_s23 = smov %s1638_s28 }
 0x2a4   : > { %s1636_s24 = smov %s1642_s29  ;;  %17 = sbr.rel (!%p15_p10) target bundleno = 5 (0x5), region = 84 }
 0x2ab   :  { %870 = vsyncpa [#allocation5], 1 }
 0x2ac   :  { %872 = vsyncpa [#allocation5 + $0x1], 1 }

</bundles_post_ra>
